<compile_context>
chip_gen: v6e
topology: v6e:2x2x1
jax: 0.10.0
libtpu: 0.0.40
codegen_flags: <defaults>
</compile_context>

<pallas_src>
import jax
import jax.numpy as jnp
from jax.experimental import pallas as pl
from jax.experimental.pallas import tpu as pltpu

EPS = 1e-5


def encoder_kernel(x_ref, p_ref, o_ref):
    x = x_ref[...]                 # [N, 8]
    p = p_ref[...]                 # [8, 12] packed parameter slab

    # Packed layout (see pack_params):
    w1  = p[0:8, 0:4]              # Linear(8,4) weight, [in, out]
    w2  = p[0:4, 4:6]              # Linear(4,2) weight, [in, out]
    g1  = p[0:1, 6:10]             # BN(4) gamma   [1, 4]
    be1 = p[1:2, 6:10]             # BN(4) beta    [1, 4]
    g2  = p[0:1, 10:12]            # BN(2) gamma   [1, 2]
    be2 = p[1:2, 10:12]            # BN(2) beta    [1, 2]

    inv_n = 1.0 / x.shape[0]       # static

    # ---- Linear(8, 4): single MXU push, f32 accumulate ----
    # (bias dropped: exactly cancelled by the training-mode BN mean subtraction)
    h = jnp.dot(x, w1, preferred_element_type=jnp.float32)          # [N, 4]

    # ---- BatchNorm1d(4): fused sum / sum-of-squares (one XLU reduce),
    #      folded into a single per-feature scale/shift, then ReLU ----
    st1  = jnp.sum(jnp.concatenate([h, h * h], axis=1),
                   axis=0, keepdims=True)                            # [1, 8]
    mu1  = st1[:, 0:4] * inv_n
    var1 = st1[:, 4:8] * inv_n - mu1 * mu1                           # biased var
    sc1  = g1 * jax.lax.rsqrt(var1 + EPS)
    sh1  = be1 - mu1 * sc1
    h = jnp.maximum(h * sc1 + sh1, 0.0)

    # ---- Linear(4, 2): single MXU push, f32 accumulate ----
    z = jnp.dot(h, w2, preferred_element_type=jnp.float32)           # [N, 2]

    # ---- BatchNorm1d(2): fused stats + scale/shift, then ReLU ----
    st2  = jnp.sum(jnp.concatenate([z, z * z], axis=1),
                   axis=0, keepdims=True)                            # [1, 4]
    mu2  = st2[:, 0:2] * inv_n
    var2 = st2[:, 2:4] * inv_n - mu2 * mu2
    sc2  = g2 * jax.lax.rsqrt(var2 + EPS)
    sh2  = be2 - mu2 * sc2
    o_ref[...] = jnp.maximum(z * sc2 + sh2, 0.0)


def pack_params(p):
    """Pack all per-feature parameters into a single [8, 12] f32 slab.

    Call ONCE at init time (hoisted out of the per-forward hot path)."""
    P = jnp.zeros((8, 12), jnp.float32)
    P = P.at[0:8, 0:4].set(p["w1"])      # Linear(8,4) weight  [in, out]
    P = P.at[0:4, 4:6].set(p["w2"])      # Linear(4,2) weight  [in, out]
    P = P.at[0:1, 6:10].set(p["g1"])     # BN(4) gamma
    P = P.at[1:2, 6:10].set(p["be1"])    # BN(4) beta
    P = P.at[0:1, 10:12].set(p["g2"])    # BN(2) gamma
    P = P.at[1:2, 10:12].set(p["be2"])   # BN(2) beta
    return P


def encoder_forward(x, packed_params):
    """Forward pass. `packed_params` is the pre-packed [8, 12] slab."""
    n = x.shape[0]
    return pl.pallas_call(
        encoder_kernel,
        out_shape=jax.ShapeDtypeStruct((n, 2), jnp.float32),
        # No grid: single invocation, whole arrays resident in VMEM,
        # no software-pipeline / double-buffer scaffolding.
        in_specs=[
            pl.BlockSpec(memory_space=pltpu.MemorySpace.VMEM),
            pl.BlockSpec(memory_space=pltpu.MemorySpace.VMEM),
        ],
        out_specs=pl.BlockSpec(memory_space=pltpu.MemorySpace.VMEM),
    )(x, packed_params)


def init_params(key):
    """Deterministic init mirroring PyTorch defaults (shapes from __init__)."""
    k1, k2, k3, k4 = jax.random.split(key, 4)
    bound1 = 1.0 / jnp.sqrt(8.0)   # Linear(8,4): fan_in = 8
    bound2 = 1.0 / jnp.sqrt(4.0)   # Linear(4,2): fan_in = 4
    return {
        # Linear(8, 4): stored as [in, out]
        "w1": jax.random.uniform(k1, (8, 4), jnp.float32, -bound1, bound1),
        "b1": jax.random.uniform(k2, (1, 4), jnp.float32, -bound1, bound1),
        # BatchNorm1d(4): gamma=1, beta=0
        "g1": jnp.ones((1, 4), jnp.float32),
        "be1": jnp.zeros((1, 4), jnp.float32),
        # Linear(4, 2): stored as [in, out]
        "w2": jax.random.uniform(k3, (4, 2), jnp.float32, -bound2, bound2),
        "b2": jax.random.uniform(k4, (1, 2), jnp.float32, -bound2, bound2),
        # BatchNorm1d(2)
        "g2": jnp.ones((1, 2), jnp.float32),
        "be2": jnp.zeros((1, 2), jnp.float32),
    }


def encoder_ref(x, p):
    """Pure-JAX reference with full PyTorch semantics (incl. Linear biases)."""
    h = x @ p["w1"] + p["b1"]
    mu = h.mean(0, keepdims=True)
    var = ((h - mu) ** 2).mean(0, keepdims=True)
    h = (h - mu) / jnp.sqrt(var + EPS) * p["g1"] + p["be1"]
    h = jnp.maximum(h, 0.0)
    z = h @ p["w2"] + p["b2"]
    mu2 = z.mean(0, keepdims=True)
    var2 = ((z - mu2) ** 2).mean(0, keepdims=True)
    z = (z - mu2) / jnp.sqrt(var2 + EPS) * p["g2"] + p["be2"]
    return jnp.maximum(z, 0.0)


if __name__ == "__main__":
    key = jax.random.PRNGKey(0)
    kx, kp = jax.random.split(key)
    batch = 8
    x = jax.random.normal(kx, (batch, 8), jnp.float32)   # encoder input: [N, 8]
    params = init_params(kp)

    # Pack once (init-time), outside the per-forward hot path.
    packed = jax.block_until_ready(pack_params(params))

    out = encoder_forward(x, packed)
    out = jax.block_until_ready(out)

    ref = encoder_ref(x, params)
    assert out.shape == (batch, 2)
    # Kernel drops the (BN-cancelled) Linear biases and uses one-pass variance,
    # which is mathematically identical but not bit-identical -> 1e-4 tolerance.
    assert jnp.allclose(out, ref, atol=1e-4, rtol=1e-4), "mismatch vs reference"
    print("KERNEL_OK")
</pallas_src>

<mosaic_0001>
module attributes {stable_mosaic.version = 11 : i64} {
  func.func @encoder_kernel(%arg0: memref<8x8xf32, #tpu.memory_space<vmem>>, %arg1: memref<8x12xf32, #tpu.memory_space<vmem>>, %arg2: memref<8x2xf32, #tpu.memory_space<vmem>>) attributes {dimension_semantics = [], scalar_prefetch = 0 : i64, scratch_operands = 0 : i64, tpu.core_type = #tpu.core_type<tc>} {
    %c0 = arith.constant 0 : index
    %c0_0 = arith.constant 0 : index
    %0 = vector.load %arg0[%c0, %c0_0] : memref<8x8xf32, #tpu.memory_space<vmem>>, vector<8x8xf32>
    %c0_1 = arith.constant 0 : index
    %c0_2 = arith.constant 0 : index
    %1 = vector.load %arg1[%c0_1, %c0_2] : memref<8x12xf32, #tpu.memory_space<vmem>>, vector<8x12xf32>
    %2 = vector.extract_strided_slice %1 {offsets = [0, 0], sizes = [8, 4], strides = [1, 1]} : vector<8x12xf32> to vector<8x4xf32>
    %3 = vector.extract_strided_slice %1 {offsets = [0, 4], sizes = [4, 2], strides = [1, 1]} : vector<8x12xf32> to vector<4x2xf32>
    %4 = vector.extract_strided_slice %1 {offsets = [0, 6], sizes = [1, 4], strides = [1, 1]} : vector<8x12xf32> to vector<1x4xf32>
    %5 = vector.extract_strided_slice %1 {offsets = [1, 6], sizes = [1, 4], strides = [1, 1]} : vector<8x12xf32> to vector<1x4xf32>
    %6 = vector.extract_strided_slice %1 {offsets = [0, 10], sizes = [1, 2], strides = [1, 1]} : vector<8x12xf32> to vector<1x2xf32>
    %7 = vector.extract_strided_slice %1 {offsets = [1, 10], sizes = [1, 2], strides = [1, 1]} : vector<8x12xf32> to vector<1x2xf32>
    %cst = arith.constant dense<0.000000e+00> : vector<8x4xf32>
    %8 = tpu.matmul %0, %2, %cst {dimension_numbers = #tpu.dot_dimension_numbers<[1], [0], [0], [1], [0, 0, 1, 1], [], []>} : vector<8x8xf32>, vector<8x4xf32>, vector<8x4xf32> -> vector<8x4xf32>
    %9 = arith.mulf %8, %8 : vector<8x4xf32>
    %10 = tpu.concatenate %8, %9 in 1 : vector<8x4xf32>, vector<8x4xf32> -> vector<8x8xf32>
    %cst_3 = arith.constant dense<0.000000e+00> : vector<8xf32>
    %11 = vector.multi_reduction <add>, %10, %cst_3 [0] : vector<8x8xf32> to vector<8xf32>
    %12 = vector.shape_cast %11 : vector<8xf32> to vector<1x8xf32>
    %13 = vector.extract_strided_slice %12 {offsets = [0, 0], sizes = [1, 4], strides = [1, 1]} : vector<1x8xf32> to vector<1x4xf32>
    %cst_4 = arith.constant 1.250000e-01 : f32
    %14 = vector.broadcast %cst_4 : f32 to vector<1x4xf32>
    %15 = arith.mulf %13, %14 : vector<1x4xf32>
    %16 = vector.extract_strided_slice %12 {offsets = [0, 4], sizes = [1, 4], strides = [1, 1]} : vector<1x8xf32> to vector<1x4xf32>
    %cst_5 = arith.constant 1.250000e-01 : f32
    %17 = vector.broadcast %cst_5 : f32 to vector<1x4xf32>
    %18 = arith.mulf %16, %17 : vector<1x4xf32>
    %19 = arith.mulf %15, %15 : vector<1x4xf32>
    %20 = arith.subf %18, %19 : vector<1x4xf32>
    %cst_6 = arith.constant 9.99999974E-6 : f32
    %21 = vector.broadcast %cst_6 : f32 to vector<1x4xf32>
    %22 = arith.addf %20, %21 : vector<1x4xf32>
    %23 = math.rsqrt %22 : vector<1x4xf32>
    %24 = arith.mulf %4, %23 : vector<1x4xf32>
    %25 = arith.mulf %15, %24 : vector<1x4xf32>
    %26 = arith.subf %5, %25 : vector<1x4xf32>
    %27 = vector.broadcast %24 : vector<1x4xf32> to vector<8x4xf32>
    %28 = arith.mulf %8, %27 : vector<8x4xf32>
    %29 = vector.broadcast %26 : vector<1x4xf32> to vector<8x4xf32>
    %30 = arith.addf %28, %29 : vector<8x4xf32>
    %cst_7 = arith.constant 0.000000e+00 : f32
    %31 = vector.broadcast %cst_7 : f32 to vector<8x4xf32>
    %32 = arith.maximumf %30, %31 : vector<8x4xf32>
    %cst_8 = arith.constant dense<0.000000e+00> : vector<8x2xf32>
    %33 = tpu.matmul %32, %3, %cst_8 {dimension_numbers = #tpu.dot_dimension_numbers<[1], [0], [0], [1], [0, 0, 1, 1], [], []>} : vector<8x4xf32>, vector<4x2xf32>, vector<8x2xf32> -> vector<8x2xf32>
    %34 = arith.mulf %33, %33 : vector<8x2xf32>
    %35 = tpu.concatenate %33, %34 in 1 : vector<8x2xf32>, vector<8x2xf32> -> vector<8x4xf32>
    %cst_9 = arith.constant dense<0.000000e+00> : vector<4xf32>
    %36 = vector.multi_reduction <add>, %35, %cst_9 [0] : vector<8x4xf32> to vector<4xf32>
    %37 = vector.shape_cast %36 : vector<4xf32> to vector<1x4xf32>
    %38 = vector.extract_strided_slice %37 {offsets = [0, 0], sizes = [1, 2], strides = [1, 1]} : vector<1x4xf32> to vector<1x2xf32>
    %cst_10 = arith.constant 1.250000e-01 : f32
    %39 = vector.broadcast %cst_10 : f32 to vector<1x2xf32>
    %40 = arith.mulf %38, %39 : vector<1x2xf32>
    %41 = vector.extract_strided_slice %37 {offsets = [0, 2], sizes = [1, 2], strides = [1, 1]} : vector<1x4xf32> to vector<1x2xf32>
    %cst_11 = arith.constant 1.250000e-01 : f32
    %42 = vector.broadcast %cst_11 : f32 to vector<1x2xf32>
    %43 = arith.mulf %41, %42 : vector<1x2xf32>
    %44 = arith.mulf %40, %40 : vector<1x2xf32>
    %45 = arith.subf %43, %44 : vector<1x2xf32>
    %cst_12 = arith.constant 9.99999974E-6 : f32
    %46 = vector.broadcast %cst_12 : f32 to vector<1x2xf32>
    %47 = arith.addf %45, %46 : vector<1x2xf32>
    %48 = math.rsqrt %47 : vector<1x2xf32>
    %49 = arith.mulf %6, %48 : vector<1x2xf32>
    %50 = arith.mulf %40, %49 : vector<1x2xf32>
    %51 = arith.subf %7, %50 : vector<1x2xf32>
    %52 = vector.broadcast %49 : vector<1x2xf32> to vector<8x2xf32>
    %53 = arith.mulf %33, %52 : vector<8x2xf32>
    %54 = vector.broadcast %51 : vector<1x2xf32> to vector<8x2xf32>
    %55 = arith.addf %53, %54 : vector<8x2xf32>
    %cst_13 = arith.constant 0.000000e+00 : f32
    %56 = vector.broadcast %cst_13 : f32 to vector<8x2xf32>
    %57 = arith.maximumf %55, %56 : vector<8x2xf32>
    %c0_14 = arith.constant 0 : index
    %c0_15 = arith.constant 0 : index
    %58 = vector.load %arg2[%c0_14, %c0_15] : memref<8x2xf32, #tpu.memory_space<vmem>>, vector<8x2xf32>
    tpu.vector_store %arg2[%c0_14, %c0_15], %57 {strides = array<i32>} : memref<8x2xf32, #tpu.memory_space<vmem>>, vector<8x2xf32>,
    return
  }
}

</mosaic_0001>

<bundles_post_ra>
// kernel: tpu_custom_call.1
= control target key start
LH: loop header
LB: loop body
LE: loop exit
PB: predicated region body
PF: predicated region fallthrough
CT: control target
= control target key end

     0   :  { %7 = vsyncpa [#allocation3], 0  ;;  %s446_s0 = inlined_call_operand.hbm [shape: f32[8,8], index: 0, kind: input, shape index: {}]   ;;  %s447_s1 = inlined_call_operand.hbm [shape: f32[8,12], index: 1, kind: input, shape index: {}]   ;;  %s448_s2 = inlined_call_operand.vmem [shape: f32[8,2], index: 2, kind: output, shape index: {}]  }
   0x1   :  { %8 = vsyncpa [#allocation5], 0  ;;  %s390_s9 = smov [#allocation2]   ;;  %s391_s11 = smov [#allocation4]  }
   0x2   :  { %s15_s10 = sshll.u32 %s390_s9, 4  ;;  %s25_s12 = sshll.u32 %s391_s11, 4  ;;  %s16_s10 = int_to_ptr.vmem [resolvable:$true] %s15_s10  ;;  %s26_s12 = int_to_ptr.vmem [resolvable:$true] %s25_s12 }
   0x3   :  { %s354_s13 = scalar_lea.vmem %s16_s10, 128  ;;  %p359_p1 = scmp.lt.s32.totalorder %s16_s10, %s16_s10 }
   0x4   :  { %p355_p0 = scmp.ne.s32.totalorder %s16_s10, %s354_s13  ;;  %p360_p2 = scmp.lt.s32.totalorder %s354_s13, %s354_s13 }
   0x6   :  { %p361_p3 = por %p360_p2, %p359_p1 }
   0x8   :  { %p362_p4 = pnand %p361_p3, %p355_p0 }
   0xa   :  { %365 = shalt.err (!%p362_p4)
}
   0xb   :  { %18 = dma.hbm_to_vmem [thread:$0]  %s446_s0, 128, %s16_s10, [#allocation3]  }
   0xc   :  { %s374_s16 = scalar_lea.vmem %s26_s12, 128  ;;  %p379_p6 = scmp.lt.s32.totalorder %s26_s12, %s26_s12 }
   0xd   :  { %p375_p5 = scmp.ne.s32.totalorder %s26_s12, %s374_s16  ;;  %p380_p7 = scmp.lt.s32.totalorder %s374_s16, %s374_s16 }
   0xf   :  { %p381_p8 = por %p380_p7, %p379_p6 }
  0x11   :  { %p382_p9 = pnand %p381_p8, %p375_p5 }
  0x13   :  { %385 = shalt.err (!%p382_p9)
}
  0x14   :  { %28 = dma.hbm_to_vmem [thread:$0]  %s447_s1, 128, %s26_s12, [#allocation5]  }
  0x15   :  { %386 = dma.done.wait [#allocation3], 128  }
  0x16   :  { %387 = vsyncadd [#allocation3], 4294967168 }
  0x17   :  { %388 = dma.done.wait [#allocation5], 128  }
  0x18   :  { %389 = vsyncadd [#allocation5], 4294967168  ;;  %v392_v0 = vmov 0.0   ;;  %vm393_vm0 = vmmov 0   ;;  %vm37_vm1 = vcmask 64512   ;;  %v423_v1 = vld [vmem:[#allocation4] sm:$0xff]  ;;  %v150_v21 = vlaneseq }
  0x19   :  { %320 = vmatprep.subr.mxu0 %v392_v0  ;;  %322 = vmatprep.mubr.msk.f32.mxu0 %vm393_vm0, %v392_v0  ;;  %v35_v2 = vld [vmem:[#allocation2] sm:$0xff]  ;;  %s394_s0 = smov 4   ;;  %vm116_vm2 = vcmask 31744   ;;  %s395_s1 = smov 2   ;;  %vm175_vm3 = vcmask 1043456   ;;  %vm253_vm4 = vcmask 15360  }
  0x1a   :  { %325 = vmatprep.subr.mxu1 %v392_v0  ;;  %327 = vmatprep.mubr.msk.f32.mxu1 %vm393_vm0, %v392_v0  ;;  %v428_v22 = vshrl.u32 %v150_v21, 7  ;;  %s396_s19 = smov 122   ;;  %s397_s20 = smov 124  }
  0x1b   :  { %321 = vmatpush3.msra.mxu0 %v423_v1  ;;  %s398_s21 = smov 6   ;;  %s399_s22 = smov 8  }
  0x1c   :  { %323 = vmatmul.mubr.msk.f32.vlgmr.msra.gmra.mxu0 %vm37_vm1, %v35_v2  ;;  %v152_v24 = vsub.s32 0, %v428_v22  ;;  %v161_v32 = vsub.s32 1, %v428_v22  ;;  %s400_s23 = smov 118   ;;  %s401_s24 = smov 10  }
  0xdc   :  { %v107_v3 = vpop.f32.mrf.mxu0 }
  0xdd   :  { %v111_v4 = vmul.f32 %v107_v3, %v107_v3 }
  0xde   :  { %v324_v5 = vpop.f32.mrf.mxu0 }
  0xdf   :  { %113 = vrot.lane.b32.xlu0 %v111_v4, %s394_s0 }
 0x151   :  { %v114_v6 = vpop.permute.xlu0 %113 }
 0x152   :  { %v117_v7 = vsel %vm116_vm2, %v107_v3, %v114_v6 }
 0x153   :  { %v118_v8 = vsel %vm37_vm1, %v117_v7, 0.0 }
 0x154   :  { %v119_v9 = vrot.slane %v118_v8, 4 }
 0x156   :  { %v120_v10 = vadd.f32 %v119_v9, %v118_v8 }
 0x158   :  { %v121_v11 = vrot.slane %v120_v10, 2 }
 0x15a   :  { %v122_v12 = vadd.f32 %v121_v11, %v120_v10 }
 0x15c   :  { %v123_v13 = vrot.slane %v122_v12, 1 }
 0x15e   :  { %v124_v14 = vadd.f32 %v123_v13, %v122_v12 }
 0x160   :  { %v125_v15 = vmul.f32 0.125, %v124_v14 }
 0x162   :  { %v126_v16 = vmul.f32 %v125_v15, %v125_v15 }
 0x164   :  { %128 = vrot.lane.b32.xlu0 %v126_v16, %s394_s0 }
 0x1d6   :  { %v129_v17 = vpop.permute.xlu0 %128 }
 0x1d7   :  { %v131_v18 = vsub.f32 %v125_v15, %v129_v17 }
 0x1d9   :  { %v132_v19 = vadd.f32 1e-05, %v131_v18 }
 0x1db   :  { %342 = vrsqrt.f32 %v132_v19 }
 0x1e8   :  { %v343_v20 = vpop.eup %342 }
 0x1e9   :  { %135 = vrot.lane.b32.xlu1 %v343_v20, %s395_s1 }
 0x25b   :  { %v136_v23 = vpop.permute.xlu1 %135 }
 0x25c   :  { %v138_v25 = vmul.f32 %v136_v23, %v423_v1 }
 0x25e   :  { %140 = vrot.lane.b32.xlu1 %v138_v25, %s396_s19  ;;  %v153_v26 = vrot.slane %v138_v25, %v152_v24 }
 0x262   :  { %155 = vrot.lane.b32.xlu1 %v153_v26, %s396_s19 }
 0x266   :  { %170 = vrot.lane.b32.xlu1 %v423_v1, %s397_s20 }
 0x2d0   :  { %v141_v27 = vpop.permute.xlu1 %140 }
 0x2d1   :  { %v143_v28 = vmul.f32 %v141_v27, %v125_v15 }
 0x2d3   :  { %v145_v29 = vrot.slane %v143_v28, 7 }
 0x2d4   :  { %v156_v30 = vpop.permute.xlu1 %155 }
 0x2d5   :  { %146 = vrot.lane.b32.xlu0 %v145_v29, %s398_s21  ;;  %v158_v36 = vmul.f32 %v156_v30, %v107_v3 }
 0x2d8   :  { %v171_v31 = vpop.permute.xlu1 %170 }
 0x2d9   :  { %326 = vmatpush3.msk.msra.mxu1 %vm175_vm3, %v171_v31 }
 0x347   :  { %v147_v33 = vpop.permute.xlu0 %146 }
 0x348   :  { %v149_v34 = vsub.f32 %v423_v1, %v147_v33 }
 0x34a   :  { %v162_v35 = vrot.slane %v149_v34, %v161_v32 }
 0x34c   :  { %164 = vrot.lane.b32.xlu0 %v162_v35, %s396_s19 }
 0x3be   :  { %v165_v37 = vpop.permute.xlu0 %164 }
 0x3bf   :  { %v167_v38 = vadd.f32 %v165_v37, %v158_v36 }
 0x3c1   :  { %v168_v39 = vmax.f32 %v167_v38, 0.0 }
 0x3c3   :  { %328 = vmatmul.mubr.msk.f32.vlgmr.msra.gmra.mxu1 %vm116_vm2, %v168_v39 }
 0x483   :  { %v244_v40 = vpop.f32.mrf.mxu1 }
 0x484   :  { %v248_v41 = vmul.f32 %v244_v40, %v244_v40 }
 0x485   :  { %v329_v42 = vpop.f32.mrf.mxu1 }
 0x486   :  { %250 = vrot.lane.b32.xlu0 %v248_v41, %s395_s1 }
 0x4f8   :  { %v251_v43 = vpop.permute.xlu0 %250 }
 0x4f9   :  { %v254_v44 = vsel %vm253_vm4, %v244_v40, %v251_v43 }
 0x4fa   :  { %v255_v45 = vsel %vm116_vm2, %v254_v44, 0.0 }
 0x4fb   :  { %v256_v46 = vrot.slane %v255_v45, 4 }
 0x4fd   :  { %v257_v47 = vadd.f32 %v256_v46, %v255_v45 }
 0x4ff   :  { %v258_v48 = vrot.slane %v257_v47, 2 }
 0x501   :  { %v259_v49 = vadd.f32 %v258_v48, %v257_v47 }
 0x503   :  { %v260_v50 = vrot.slane %v259_v49, 1 }
 0x505   :  { %v261_v51 = vadd.f32 %v260_v50, %v259_v49 }
 0x507   :  { %v262_v52 = vmul.f32 0.125, %v261_v51 }
 0x509   :  { %v263_v53 = vmul.f32 %v262_v52, %v262_v52 }
 0x50b   :  { %265 = vrot.lane.b32.xlu1 %v263_v53, %s395_s1 }
 0x57d   :  { %v266_v54 = vpop.permute.xlu1 %265 }
 0x57e   :  { %v268_v55 = vsub.f32 %v262_v52, %v266_v54 }
 0x580   :  { %v269_v56 = vadd.f32 1e-05, %v268_v55 }
 0x582   :  { %344 = vrsqrt.f32 %v269_v56 }
 0x58f   :  { %v345_v57 = vpop.eup %344 }
 0x590   :  { %272 = vrot.lane.b32.xlu0 %v345_v57, %s399_s22 }
 0x602   :  { %v273_v58 = vpop.permute.xlu0 %272 }
 0x603   :  { %v275_v59 = vmul.f32 %v273_v58, %v423_v1 }
 0x605   :  { %277 = vrot.lane.b32.xlu1 %v275_v59, %s400_s23  ;;  %v290_v60 = vrot.slane %v275_v59, %v152_v24 }
 0x609   :  { %292 = vrot.lane.b32.xlu1 %v290_v60, %s400_s23 }
 0x677   :  { %v278_v61 = vpop.permute.xlu1 %277 }
 0x678   :  { %v280_v62 = vmul.f32 %v278_v61, %v262_v52 }
 0x67a   :  { %v282_v63 = vrot.slane %v280_v62, 7 }
 0x67b   :  { %v293_v4 = vpop.permute.xlu1 %292 }
 0x67c   :  { %283 = vrot.lane.b32.xlu0 %v282_v63, %s401_s24  ;;  %v295_v5 = vmul.f32 %v293_v4, %v244_v40 }
 0x6ee   :  { %v284_v0 = vpop.permute.xlu0 %283 }
 0x6ef   :  { %v286_v2 = vsub.f32 %v423_v1, %v284_v0 }
 0x6f1   :  { %v299_v3 = vrot.slane %v286_v2, %v161_v32 }
 0x6f3   :  { %301 = vrot.lane.b32.xlu0 %v299_v3, %s400_s23 }
 0x765   :  { %v302_v6 = vpop.permute.xlu0 %301 }
 0x766   :  { %v304_v7 = vadd.f32 %v302_v6, %v295_v5 }
 0x768   :  { %v305_v8 = vmax.f32 %v304_v7, 0.0 }
 0x76a   :  { %306 = vst.msk [vmem:[%s448_s2] sm:$0xff] %vm253_vm4, %v305_v8 }
 0x76b   :  { %311 = vsyncpa [#allocation3], 1 }
 0x76c   :  { %312 = vsyncpa [#allocation5], 1 }

</bundles_post_ra>
